<compile_context>
chip_gen: v6e
topology: v6e:2x2x1
jax: 0.10.0
libtpu: 0.0.40
codegen_flags: <defaults>
</compile_context>

<pallas_src>
import functools

import jax
import jax.numpy as jnp
from jax import lax
from jax.experimental import pallas as pl
from jax.experimental.pallas import tpu as pltpu

_LANE = 128
_SUBLANE = 8
# (2048, 128) f32 = 1 MiB per input tile; 3 inputs x 2 buffers = 6 MiB total,
# safe for v5e (16 MiB default scoped VMEM), v6e (32 MiB) and v7x (32/64 MiB).
_MAX_BLOCK_ROWS = 2048


def _round_up(x, m):
    return (x + m - 1) // m * m


def _vif_con_kernel(vis_ref, inf_ref, fus_ref, out_ref, *, block_rows, valid_rows):
    """Per-block elementwise score + sublane-group partial sum (VPU-only loop)."""
    vis = vis_ref[...].astype(jnp.float32)
    infi = inf_ref[...].astype(jnp.float32)
    fus = fus_ref[...].astype(jnp.float32)

    diff = infi - fus
    score = jnp.abs(vis - fus) + jnp.where(
        vis <= infi, jnp.float32(10.0) * diff * diff, jnp.float32(0.0)
    )

    if valid_rows is not None:
        # Last block overhangs the (rows, 128) slab: out-of-bounds rows hold
        # undefined data, so mask them to zero before accumulating.
        row = pl.program_id(0) * block_rows + lax.broadcasted_iota(
            jnp.int32, score.shape, 0
        )
        score = jnp.where(row < valid_rows, score, jnp.float32(0.0))

    # Tile-aligned reshape -> sequence of (8,128) vreg adds (no XLU reduce, no
    # scalar RMW in the hot loop). Cross-lane reduce + 1/N happen in the wrapper.
    partial = jnp.sum(
        score.reshape(block_rows // _SUBLANE, _SUBLANE, _LANE), axis=0
    )
    out_ref[...] = partial[None]


def vif_con_loss_pallas(vis_images, inf_images, fusion_images):
    """Pallas implementation of VIF_CON_Loss.forward. Returns a scalar f32."""
    assert vis_images.shape == inf_images.shape == fusion_images.shape
    total = int(vis_images.size)

    lane_pad = (-total) % _LANE

    def _prep(x):
        x = jnp.asarray(x).reshape(-1)  # keep original dtype; cast in-kernel
        if lane_pad:
            # Rare (numel not a multiple of 128); zero pads contribute 0.
            x = jnp.pad(x, (0, lane_pad))
        return x.reshape(-1, _LANE)

    vis2d = _prep(vis_images)
    inf2d = _prep(inf_images)
    fus2d = _prep(fusion_images)

    rows = vis2d.shape[0]
    block_rows = min(_MAX_BLOCK_ROWS, _round_up(rows, _SUBLANE))
    grid_r = pl.cdiv(rows, block_rows)
    valid_rows = None if rows % block_rows == 0 else rows

    kernel = functools.partial(
        _vif_con_kernel, block_rows=block_rows, valid_rows=valid_rows
    )

    in_spec = pl.BlockSpec((block_rows, _LANE), lambda i: (i, 0))
    out_spec = pl.BlockSpec((1, _SUBLANE, _LANE), lambda i: (i, 0, 0))

    itemsize = jnp.dtype(vis_images.dtype).itemsize
    cost = pl.CostEstimate(
        flops=9 * total,
        transcendentals=0,
        bytes_accessed=3 * total * itemsize + grid_r * _SUBLANE * _LANE * 4,
    )

    partials = pl.pallas_call(
        kernel,
        out_shape=jax.ShapeDtypeStruct((grid_r, _SUBLANE, _LANE), jnp.float32),
        grid=(grid_r,),
        in_specs=[in_spec, in_spec, in_spec],
        out_specs=out_spec,
        compiler_params=pltpu.CompilerParams(
            dimension_semantics=("parallel",)
        ),
        cost_estimate=cost,
    )(vis2d, inf2d, fus2d)

    return jnp.sum(partials) / jnp.float32(total)


class VIFConLossJAX:
    """Mirror of the PyTorch module (parameters init'd deterministically)."""

    def __init__(self, sensors, kernal_size=10, num_channels=1, C=0.0009):
        self.sensors = sensors
        self.kernal_size = kernal_size
        self.num_channels = num_channels
        self.c = C
        # TODO(synk): gra_kernal / avg_kernal (and `one_size` in forward) are
        # constructed in the PyTorch module but never used by forward(); kept
        # here only for parity.
        self.gra_kernal = jnp.array(
            [[[[-1.0, -4.0, -1.0], [-4.0, 20.0, -4.0], [-1.0, -4.0, -1.0]]]],
            dtype=jnp.float32,
        )
        self.avg_kernal = (
            jnp.ones((num_channels, 1, kernal_size, kernal_size), jnp.float32)
            / float(kernal_size**2)
        )

    def __call__(self, input_images, output_images):
        vis_images = input_images[self.sensors[0]]
        inf_images = input_images[self.sensors[1]]
        fusion_images = output_images
        return vif_con_loss_pallas(vis_images, inf_images, fusion_images)


def _reference(vis, infi, fus):
    """Pure-JAX reference matching the PyTorch semantics."""
    vis = vis.astype(jnp.float32)
    infi = infi.astype(jnp.float32)
    fus = fus.astype(jnp.float32)
    score = jnp.abs(vis - fus) + 10.0 * (vis <= infi).astype(jnp.float32) * (
        infi - fus
    ) ** 2
    return jnp.mean(score)


if __name__ == "__main__":
    key = jax.random.PRNGKey(0)

    loss_mod = VIFConLossJAX(sensors=("vis", "inf"))

    # Case 1: standard small shape (numel multiple of 128, no pad/mask path).
    k1, k2, k3, key = jax.random.split(key, 4)
    B, C, H, W = 2, 1, 16, 16  # num_channels=1 per module default
    vis = jax.random.uniform(k1, (B, C, H, W), jnp.float32)
    infr = jax.random.uniform(k2, (B, C, H, W), jnp.float32)
    fus = jax.random.uniform(k3, (B, C, H, W), jnp.float32)

    out = jax.block_until_ready(loss_mod({"vis": vis, "inf": infr}, fus))
    ref = jax.block_until_ready(_reference(vis, infr, fus))
    assert jnp.allclose(out, ref, rtol=1e-5, atol=1e-6), (out, ref)

    # Case 2: ragged shape exercising the lane-pad + in-kernel tail mask path.
    k1, k2, k3, key = jax.random.split(key, 4)
    B2, C2, H2, W2 = 2, 1, 20, 20
    vis2 = jax.random.uniform(k1, (B2, C2, H2, W2), jnp.float32)
    infr2 = jax.random.uniform(k2, (B2, C2, H2, W2), jnp.float32)
    fus2 = jax.random.uniform(k3, (B2, C2, H2, W2), jnp.float32)

    out2 = jax.block_until_ready(loss_mod({"vis": vis2, "inf": infr2}, fus2))
    ref2 = jax.block_until_ready(_reference(vis2, infr2, fus2))
    assert jnp.allclose(out2, ref2, rtol=1e-5, atol=1e-6), (out2, ref2)

    print("KERNEL_OK")
</pallas_src>

<mosaic_0001>
module attributes {stable_mosaic.version = 11 : i64} {
  func.func @_vif_con_kernel(%arg0: i32, %arg1: memref<8x128xf32, #tpu.memory_space<vmem>>, %arg2: memref<8x128xf32, #tpu.memory_space<vmem>>, %arg3: memref<8x128xf32, #tpu.memory_space<vmem>>, %arg4: memref<1x8x128xf32, #tpu.memory_space<vmem>>) attributes {dimension_semantics = [#tpu.dimension_semantics<parallel>], iteration_bounds = array<i64: 1>, scalar_prefetch = 0 : i64, scratch_operands = 0 : i64, tpu.core_type = #tpu.core_type<tc>, window_params = [{transform_indices = @transform_0, window_bounds = array<i64: 8, 128>}, {transform_indices = @transform_1, window_bounds = array<i64: 8, 128>}, {transform_indices = @transform_2, window_bounds = array<i64: 8, 128>}, {transform_indices = @transform_3, window_bounds = array<i64: 1, 8, 128>}]} {
    %c0 = arith.constant 0 : index
    %c0_0 = arith.constant 0 : index
    %0 = vector.load %arg1[%c0, %c0_0] : memref<8x128xf32, #tpu.memory_space<vmem>>, vector<8x128xf32>
    %c0_1 = arith.constant 0 : index
    %c0_2 = arith.constant 0 : index
    %1 = vector.load %arg2[%c0_1, %c0_2] : memref<8x128xf32, #tpu.memory_space<vmem>>, vector<8x128xf32>
    %c0_3 = arith.constant 0 : index
    %c0_4 = arith.constant 0 : index
    %2 = vector.load %arg3[%c0_3, %c0_4] : memref<8x128xf32, #tpu.memory_space<vmem>>, vector<8x128xf32>
    %3 = arith.subf %1, %2 : vector<8x128xf32>
    %4 = arith.subf %0, %2 : vector<8x128xf32>
    %5 = math.absf %4 : vector<8x128xf32>
    %6 = arith.cmpf ole, %0, %1 : vector<8x128xf32>
    %cst = arith.constant 1.000000e+01 : f32
    %7 = vector.broadcast %cst : f32 to vector<8x128xf32>
    %8 = arith.mulf %7, %3 : vector<8x128xf32>
    %9 = arith.mulf %8, %3 : vector<8x128xf32>
    %cst_5 = arith.constant 0.000000e+00 : f32
    %10 = vector.broadcast %cst_5 : f32 to vector<8x128xf32>
    %11 = arith.select %6, %9, %10 : vector<8x128xi1>, vector<8x128xf32>
    %12 = arith.addf %5, %11 : vector<8x128xf32>
    %c8_i32 = arith.constant 8 : i32
    %13 = arith.muli %arg0, %c8_i32 : i32
    %14 = tpu.iota {dimensions = array<i32: 0>} : vector<8x128xi32>
    %15 = vector.broadcast %13 : i32 to vector<8x128xi32>
    %16 = arith.addi %15, %14 : vector<8x128xi32>
    %c4_i32 = arith.constant 4 : i32
    %17 = vector.broadcast %c4_i32 : i32 to vector<8x128xi32>
    %18 = arith.cmpi slt, %16, %17 : vector<8x128xi32>
    %cst_6 = arith.constant 0.000000e+00 : f32
    %19 = vector.broadcast %cst_6 : f32 to vector<8x128xf32>
    %20 = arith.select %18, %12, %19 : vector<8x128xi1>, vector<8x128xf32>
    %21 = vector.shape_cast %20 : vector<8x128xf32> to vector<1x8x128xf32>
    %cst_7 = arith.constant dense<0.000000e+00> : vector<8x128xf32>
    %22 = vector.multi_reduction <add>, %21, %cst_7 [0] : vector<1x8x128xf32> to vector<8x128xf32>
    %23 = vector.shape_cast %22 : vector<8x128xf32> to vector<1x8x128xf32>
    %c0_8 = arith.constant 0 : index
    %c0_9 = arith.constant 0 : index
    %c0_10 = arith.constant 0 : index
    %24 = vector.load %arg4[%c0_8, %c0_9, %c0_10] : memref<1x8x128xf32, #tpu.memory_space<vmem>>, vector<1x8x128xf32>
    tpu.vector_store %arg4[%c0_8, %c0_9, %c0_10], %23 {strides = array<i32>} : memref<1x8x128xf32, #tpu.memory_space<vmem>>, vector<1x8x128xf32>,
    return
  }
  func.func @transform_0(%arg0: i32) -> (i32, i32) {
    %c0_i32 = arith.constant 0 : i32
    %c0_i32_0 = arith.constant 0 : i32
    return %arg0, %c0_i32 : i32, i32
  }
  func.func @transform_1(%arg0: i32) -> (i32, i32) {
    %c0_i32 = arith.constant 0 : i32
    %c0_i32_0 = arith.constant 0 : i32
    return %arg0, %c0_i32 : i32, i32
  }
  func.func @transform_2(%arg0: i32) -> (i32, i32) {
    %c0_i32 = arith.constant 0 : i32
    %c0_i32_0 = arith.constant 0 : i32
    return %arg0, %c0_i32 : i32, i32
  }
  func.func @transform_3(%arg0: i32) -> (i32, i32, i32) {
    %c0_i32 = arith.constant 0 : i32
    %c0_i32_0 = arith.constant 0 : i32
    %c0_i32_1 = arith.constant 0 : i32
    return %arg0, %c0_i32, %c0_i32_0 : i32, i32, i32
  }
}

</mosaic_0001>

<bundles_post_ra>
// kernel: tpu_custom_call.1
= control target key start
LH: loop header
LB: loop body
LE: loop exit
PB: predicated region body
PF: predicated region fallthrough
CT: control target
= control target key end

     0   :  { %8 = vsyncpa [#allocation3], 0  ;;  %s231_s0 = inlined_call_operand.hbm [shape: f32[4,128], index: 0, kind: input, shape index: {}]   ;;  %s232_s1 = inlined_call_operand.hbm [shape: f32[4,128], index: 1, kind: input, shape index: {}]   ;;  %s233_s2 = inlined_call_operand.hbm [shape: f32[4,128], index: 2, kind: input, shape index: {}]   ;;  %s234_s3 = inlined_call_operand.hbm [shape: f32[1,8,128], index: 3, kind: output, shape index: {}]  }
   0x1   :  { %9 = vsyncpa [#allocation6], 0 }
   0x2   :  { %10 = vsyncpa [#allocation4], 0 }
   0x3   :  { %15 = vsyncadd [#allocation3], 64  ;;  %s184_s12 = smov [#allocation2]  }
   0x4   :  { %s16_s13 = sshll.u32 %s184_s12, 4  ;;  %s17_s13 = int_to_ptr.vmem [resolvable:$true] %s16_s13 }
   0x5   :  { %s106_s14 = scalar_lea.vmem %s17_s13, 64  ;;  %s110_s15 = scalar_lea.vmem %s17_s13, 128 }
   0x6   :  { %p107_p0 = scmp.ne.s32.totalorder %s17_s13, %s106_s14  ;;  %p111_p1 = scmp.lt.s32.totalorder %s17_s13, %s17_s13 }
   0x7   :  { %p112_p2 = scmp.lt.s32.totalorder %s110_s15, %s106_s14 }
   0x9   :  { %p113_p3 = por %p112_p2, %p111_p1 }
   0xb   :  { %p114_p4 = pnand %p113_p3, %p107_p0 }
   0xd   :  { %117 = shalt.err (!%p114_p4)
}
   0xe   :  { %s185_s16 = smov 64   ;;  %s186_s17 = smov 4  }
   0xf   :  { %22 = dma.hbm_to_vmem [thread:$0]  %s231_s0, 64, %s17_s13, [#allocation3], %s185_s16, %s185_s16, %s186_s17  }
  0x10   :  { %27 = vsyncadd [#allocation6], 64  ;;  %s187_s20 = smov [#allocation5]  }
  0x11   :  { %s28_s21 = sshll.u32 %s187_s20, 4  ;;  %s29_s21 = int_to_ptr.vmem [resolvable:$true] %s28_s21 }
  0x12   :  { %s126_s22 = scalar_lea.vmem %s29_s21, 64  ;;  %s130_s23 = scalar_lea.vmem %s29_s21, 128 }
  0x13   :  { %p127_p5 = scmp.ne.s32.totalorder %s29_s21, %s126_s22  ;;  %p131_p6 = scmp.lt.s32.totalorder %s29_s21, %s29_s21 }
  0x14   :  { %p132_p7 = scmp.lt.s32.totalorder %s130_s23, %s126_s22 }
  0x16   :  { %p133_p8 = por %p132_p7, %p131_p6 }
  0x18   :  { %p134_p9 = pnand %p133_p8, %p127_p5 }
  0x1a   :  { %137 = shalt.err (!%p134_p9)
}
  0x1b   :  { %34 = dma.hbm_to_vmem [thread:$0]  %s232_s1, 64, %s29_s21, [#allocation6], %s185_s16, %s185_s16, %s186_s17  }
  0x1c   :  { %39 = vsyncadd [#allocation6], 64  ;;  %s188_s0 = smov [#allocation7]  }
  0x1d   :  { %s40_s26 = sshll.u32 %s188_s0, 4  ;;  %s41_s26 = int_to_ptr.vmem [resolvable:$true] %s40_s26 }
  0x1e   :  { %s146_s27 = scalar_lea.vmem %s41_s26, 64  ;;  %s150_s28 = scalar_lea.vmem %s41_s26, 128 }
  0x1f   :  { %p147_p10 = scmp.ne.s32.totalorder %s41_s26, %s146_s27  ;;  %p151_p11 = scmp.lt.s32.totalorder %s41_s26, %s41_s26 }
  0x20   :  { %p152_p12 = scmp.lt.s32.totalorder %s150_s28, %s146_s27 }
  0x22   :  { %p153_p13 = por %p152_p12, %p151_p11 }
  0x24   :  { %p154_p0 = pnand %p153_p13, %p147_p10 }
  0x26   :  { %157 = shalt.err (!%p154_p0)
}
  0x27   :  { %46 = dma.hbm_to_vmem [thread:$0]  %s233_s2, 64, %s41_s26, [#allocation6], %s185_s16, %s185_s16, %s186_s17  }
  0x28   :  { %178 = dma.done.wait [#allocation3], 128  }
  0x29   :  { %179 = vsyncadd [#allocation3], 4294967168 }
  0x2a   :  { %180 = dma.done.wait [#allocation6], 256  }
  0x2b   :  { %181 = vsyncadd [#allocation6], 4294967040  ;;  %v68_v0 = vlaneseq  ;;  %v56_v1 = vld [vmem:[#allocation2] sm:$0xff]  ;;  %v57_v2 = vld [vmem:[#allocation5] sm:$0xff]  ;;  %s189_s1 = smov [#allocation8]  }
  0x2c   :  { %v58_v3 = vld [vmem:[#allocation7] sm:$0xff]  ;;  %vm62_vm0 = vcmp.le.f32.partialorder %v56_v1, %v57_v2  ;;  %s82_s4 = sshll.u32 %s189_s1, 4  ;;  %s83_s4 = int_to_ptr.vmem [resolvable:$true] %s82_s4 }
  0x2d   :  { %v59_v4 = vsub.f32 %v57_v2, %v58_v3  ;;  %v60_v5 = vsub.f32 %v56_v1, %v58_v3  ;;  %v69_v7 = vshrl.u32 %v68_v0, 7  ;;  %s158_s2 = scalar_lea.vmem %s83_s4, 128  ;;  %p163_p2 = scmp.lt.s32.totalorder %s83_s4, %s83_s4 }
  0x2e   :  { %p159_p1 = scmp.ne.s32.totalorder %s83_s4, %s158_s2  ;;  %p164_p3 = scmp.lt.s32.totalorder %s158_s2, %s158_s2 }
  0x2f   :  { %v63_v6 = vmul.f32 10.0, %v59_v4  ;;  %v61_v8 = vand.u32 2147483647, %v60_v5  ;;  %vm72_vm1 = vcmp.lt.s32.totalorder %v69_v7, 4 }
  0x30   :  { %p165_p4 = por %p164_p3, %p163_p2 }
  0x31   :  { %v64_v9 = vmul.f32 %v63_v6, %v59_v4 }
  0x32   :  { %p166_p5 = pnand %p165_p4, %p159_p1 }
  0x33   :  { %v65_v10 = vsel %vm62_vm0, %v64_v9, 0.0 }
  0x34   :  { %v66_v11 = vadd.f32 %v65_v10, %v61_v8 }
  0x36   :  { %v73_v12 = vsel %vm72_vm1, %v66_v11, 0.0 }
  0x37   :  { %75 = vst [vmem:[#allocation8] sm:$0xff] %v73_v12 }
  0x38   :  { %169 = shalt.err (!%p166_p5)
}
  0x39   :  { %85 = dma.vmem_to_hbm [thread:$0]  %s83_s4, 128, %s234_s3, [#allocation4]  }
  0x3a   :  { %182 = dma.done.wait [#allocation4], 128  }
  0x3b   :  { %183 = vsyncadd [#allocation4], 4294967168 }
  0x3c   :  { %89 = vsyncpa [#allocation3], 1 }
  0x3d   :  { %90 = vsyncpa [#allocation6], 1 }
  0x3e   :  { %91 = vsyncpa [#allocation4], 1 }

</bundles_post_ra>
